<compile_context>
chip_gen: v5e
topology: v5e:2x2
jax: 0.10.0
libtpu: 0.0.40
codegen_flags: <defaults>
</compile_context>

<pallas_src>
import functools

import jax
import jax.numpy as jnp
from jax.experimental import pallas as pl
from jax.experimental.pallas import tpu as pltpu

HIDDEN = 64  # nn.Linear(in_features, 64)


def _round_up(x, m):
    return (x + m - 1) // m * m


def policy_mlp_kernel(x_ref, w1_ref, b1_ref, w2_ref, b2_ref, o_ref):
    # Linear 1 (MXU, f32 accumulate) + bias + ReLU (VPU).
    h = jnp.dot(x_ref[...], w1_ref[...], preferred_element_type=jnp.float32)
    h = jnp.maximum(h + b1_ref[...], 0.0)
    # Linear 2 (MXU, K=64) + bias.
    out = jnp.dot(h, w2_ref[...], preferred_element_type=jnp.float32)
    o_ref[...] = (out + b2_ref[...]).astype(o_ref.dtype)


@functools.partial(jax.jit, static_argnames=("batch_tile",))
def policy_forward(x, w1, b1, w2, b2, *, batch_tile=1024):
    """x: (B, in_features) f32 -> logits (B, out_features) f32.

    Params are used exactly as stored (f32, (in, out) layout); no per-call
    padding, casting, or post-call slicing.
    """
    B, in_features = x.shape
    hidden = w1.shape[1]
    out_features = w2.shape[1]

    # Batch tile: multiple of 8 (f32 sublanes).  For B > 8 aim for >=2 grid
    # steps so both v7x TensorCores get work; cap at batch_tile for huge B.
    assert batch_tile % 8 == 0
    tb = min(batch_tile, max(8, _round_up((B + 1) // 2, 8)))
    grid = (pl.cdiv(B, tb),)  # ragged last tile: OOB rows dropped on writeback

    flops = 2 * B * (in_features * hidden + hidden * out_features)
    bytes_accessed = 4 * (B * in_features + B * out_features
                          + in_features * hidden + hidden
                          + hidden * out_features + out_features)

    return pl.pallas_call(
        policy_mlp_kernel,
        out_shape=jax.ShapeDtypeStruct((B, out_features), jnp.float32),
        grid_spec=pltpu.PrefetchScalarGridSpec(
            num_scalar_prefetch=0,
            grid=grid,
            in_specs=[
                pl.BlockSpec((tb, in_features), lambda i: (i, 0)),      # x tile
                pl.BlockSpec((in_features, hidden), lambda i: (0, 0)),  # w1 (full)
                pl.BlockSpec((1, hidden), lambda i: (0, 0)),            # b1 (full)
                pl.BlockSpec((hidden, out_features), lambda i: (0, 0)), # w2 (full)
                pl.BlockSpec((1, out_features), lambda i: (0, 0)),      # b2 (full)
            ],
            out_specs=pl.BlockSpec((tb, out_features), lambda i: (i, 0)),
        ),
        compiler_params=pltpu.CompilerParams(
            dimension_semantics=("parallel",)),  # shard batch tiles across TCs
        cost_estimate=pl.CostEstimate(flops=flops, transcendentals=0,
                                      bytes_accessed=bytes_accessed),
    )(x, w1, b1, w2, b2)


def init_policy_params(key, in_features, hidden, out_features):
    """Deterministic PyTorch-style (Kaiming-uniform-ish) init.

    Returned params are already in the exact layout/dtype the kernel consumes
    (f32, (in, out) weights, (1, out) biases) — nothing to pad/cast per call.
    """
    k1, k2, k3, k4 = jax.random.split(key, 4)
    bound1 = 1.0 / jnp.sqrt(in_features)
    bound2 = 1.0 / jnp.sqrt(hidden)
    w1 = jax.random.uniform(k1, (in_features, hidden), jnp.float32, -bound1, bound1)
    b1 = jax.random.uniform(k2, (1, hidden), jnp.float32, -bound1, bound1)
    w2 = jax.random.uniform(k3, (hidden, out_features), jnp.float32, -bound2, bound2)
    b2 = jax.random.uniform(k4, (1, out_features), jnp.float32, -bound2, bound2)
    return w1, b1, w2, b2


if __name__ == "__main__":
    # CartPole-like: 4 state dims, 2 actions.
    IN_FEATURES, OUT_FEATURES = 4, 2

    key = jax.random.PRNGKey(0)
    kx, kp = jax.random.split(key)
    w1, b1, w2, b2 = init_policy_params(kp, IN_FEATURES, HIDDEN, OUT_FEATURES)

    # Pure-JAX reference of the module's forward semantics.
    def ref_fwd(x):
        return jnp.maximum(x @ w1 + b1, 0.0) @ w2 + b2

    ok = True
    # B=1: single-state act() path (1-step grid, tile > array rows).
    # B=8: exact single-tile path.
    # B=40: 2-step "parallel" grid with a ragged last tile (rows dropped on write).
    for B in (1, 8, 40):
        x = jax.random.normal(jax.random.fold_in(kx, B), (B, IN_FEATURES), jnp.float32)
        logits = jax.block_until_ready(policy_forward(x, w1, b1, w2, b2))
        ok &= logits.shape == (B, OUT_FEATURES)
        ok &= bool(jnp.allclose(logits, ref_fwd(x), atol=1e-5, rtol=1e-5))

    # TODO(synk): Categorical sampling / log_prob bookkeeping from Policy.act()
    # is host-side control flow and is intentionally left outside the kernel.
    assert ok
    print("KERNEL_OK")
</pallas_src>

<mosaic_0001>
module attributes {stable_mosaic.version = 11 : i64} {
  func.func @policy_mlp_kernel(%arg0: i32, %arg1: memref<8x4xf32, #tpu.memory_space<vmem>>, %arg2: memref<4x64xf32, #tpu.memory_space<vmem>>, %arg3: memref<1x64xf32, #tpu.memory_space<vmem>>, %arg4: memref<64x2xf32, #tpu.memory_space<vmem>>, %arg5: memref<1x2xf32, #tpu.memory_space<vmem>>, %arg6: memref<8x2xf32, #tpu.memory_space<vmem>>) attributes {dimension_semantics = [#tpu.dimension_semantics<parallel>], iteration_bounds = array<i64: 1>, scalar_prefetch = 0 : i64, scratch_operands = 0 : i64, tpu.core_type = #tpu.core_type<tc>, window_params = [{transform_indices = @transform_0, window_bounds = array<i64: 8, 4>}, {pipeline_mode = #tpu.pipeline_mode<synchronous>, transform_indices = @transform_1, window_bounds = array<i64: 4, 64>}, {pipeline_mode = #tpu.pipeline_mode<synchronous>, transform_indices = @transform_2, window_bounds = array<i64: 1, 64>}, {pipeline_mode = #tpu.pipeline_mode<synchronous>, transform_indices = @transform_3, window_bounds = array<i64: 64, 2>}, {pipeline_mode = #tpu.pipeline_mode<synchronous>, transform_indices = @transform_4, window_bounds = array<i64: 1, 2>}, {transform_indices = @transform_5, window_bounds = array<i64: 8, 2>}]} {
    %c0 = arith.constant 0 : index
    %c0_0 = arith.constant 0 : index
    %0 = vector.load %arg1[%c0, %c0_0] : memref<8x4xf32, #tpu.memory_space<vmem>>, vector<8x4xf32>
    %c0_1 = arith.constant 0 : index
    %c0_2 = arith.constant 0 : index
    %1 = vector.load %arg2[%c0_1, %c0_2] : memref<4x64xf32, #tpu.memory_space<vmem>>, vector<4x64xf32>
    %cst = arith.constant dense<0.000000e+00> : vector<8x64xf32>
    %2 = tpu.matmul %0, %1, %cst {dimension_numbers = #tpu.dot_dimension_numbers<[1], [0], [0], [1], [0, 0, 1, 1], [], []>} : vector<8x4xf32>, vector<4x64xf32>, vector<8x64xf32> -> vector<8x64xf32>
    %c0_3 = arith.constant 0 : index
    %c0_4 = arith.constant 0 : index
    %3 = vector.load %arg3[%c0_3, %c0_4] : memref<1x64xf32, #tpu.memory_space<vmem>>, vector<1x64xf32>
    %4 = vector.broadcast %3 : vector<1x64xf32> to vector<8x64xf32>
    %5 = arith.addf %2, %4 : vector<8x64xf32>
    %cst_5 = arith.constant 0.000000e+00 : f32
    %6 = vector.broadcast %cst_5 : f32 to vector<8x64xf32>
    %7 = arith.maximumf %5, %6 : vector<8x64xf32>
    %c0_6 = arith.constant 0 : index
    %c0_7 = arith.constant 0 : index
    %8 = vector.load %arg4[%c0_6, %c0_7] : memref<64x2xf32, #tpu.memory_space<vmem>>, vector<64x2xf32>
    %cst_8 = arith.constant dense<0.000000e+00> : vector<8x2xf32>
    %9 = tpu.matmul %7, %8, %cst_8 {dimension_numbers = #tpu.dot_dimension_numbers<[1], [0], [0], [1], [0, 0, 1, 1], [], []>} : vector<8x64xf32>, vector<64x2xf32>, vector<8x2xf32> -> vector<8x2xf32>
    %c0_9 = arith.constant 0 : index
    %c0_10 = arith.constant 0 : index
    %10 = vector.load %arg5[%c0_9, %c0_10] : memref<1x2xf32, #tpu.memory_space<vmem>>, vector<1x2xf32>
    %11 = vector.broadcast %10 : vector<1x2xf32> to vector<8x2xf32>
    %12 = arith.addf %9, %11 : vector<8x2xf32>
    %c0_11 = arith.constant 0 : index
    %c0_12 = arith.constant 0 : index
    %13 = vector.load %arg6[%c0_11, %c0_12] : memref<8x2xf32, #tpu.memory_space<vmem>>, vector<8x2xf32>
    tpu.vector_store %arg6[%c0_11, %c0_12], %12 {strides = array<i32>} : memref<8x2xf32, #tpu.memory_space<vmem>>, vector<8x2xf32>,
    return
  }
  func.func @transform_0(%arg0: i32) -> (i32, i32) {
    %c0_i32 = arith.constant 0 : i32
    %c0_i32_0 = arith.constant 0 : i32
    return %arg0, %c0_i32 : i32, i32
  }
  func.func @transform_1(%arg0: i32) -> (i32, i32) {
    %c0_i32 = arith.constant 0 : i32
    %c0_i32_0 = arith.constant 0 : i32
    %c0_i32_1 = arith.constant 0 : i32
    return %c0_i32, %c0_i32_0 : i32, i32
  }
  func.func @transform_2(%arg0: i32) -> (i32, i32) {
    %c0_i32 = arith.constant 0 : i32
    %c0_i32_0 = arith.constant 0 : i32
    %c0_i32_1 = arith.constant 0 : i32
    return %c0_i32, %c0_i32_0 : i32, i32
  }
  func.func @transform_3(%arg0: i32) -> (i32, i32) {
    %c0_i32 = arith.constant 0 : i32
    %c0_i32_0 = arith.constant 0 : i32
    %c0_i32_1 = arith.constant 0 : i32
    return %c0_i32, %c0_i32_0 : i32, i32
  }
  func.func @transform_4(%arg0: i32) -> (i32, i32) {
    %c0_i32 = arith.constant 0 : i32
    %c0_i32_0 = arith.constant 0 : i32
    %c0_i32_1 = arith.constant 0 : i32
    return %c0_i32, %c0_i32_0 : i32, i32
  }
  func.func @transform_5(%arg0: i32) -> (i32, i32) {
    %c0_i32 = arith.constant 0 : i32
    %c0_i32_0 = arith.constant 0 : i32
    return %arg0, %c0_i32 : i32, i32
  }
}

</mosaic_0001>

<bundles_post_ra>
// kernel: policy_forward.1
= control target key start
LH: loop header
LB: loop body
LE: loop exit
PB: predicated region body
PF: predicated region fallthrough
CT: control target
= control target key end

     0   :  { %10 = vsyncpa [#allocation3], 0  ;;  %vm31_vm0 = vcmask 1043456   ;;  %vm27_vm1 = vcmask 31744   ;;  %vm68_vm2 = vcmask 523264   ;;  %vm92_vm3 = vcmask 15360   ;;  %s218_s0 = inlined_call_operand.vmem [shape: f32[1,4], index: 0, kind: input, shape index: {}]   ;;  %s219_s1 = inlined_call_operand.vmem [shape: f32[4,64], index: 1, kind: input, shape index: {}]   ;;  %s220_s2 = inlined_call_operand.vmem [shape: f32[1,64], index: 2, kind: input, shape index: {}]   ;;  %s221_s3 = inlined_call_operand.vmem [shape: f32[64,2], index: 3, kind: input, shape index: {}]   ;;  %s222_s4 = inlined_call_operand.vmem [shape: f32[1,2], index: 4, kind: input, shape index: {}]   ;;  %s223_s5 = inlined_call_operand.hbm [shape: f32[1,2], index: 5, kind: output, shape index: {}]  }
   0x1   :  { %v22_v0 = vld [vmem:[%s219_s1] sm:$0xf]  ;;  %v63_v2 = vld [vmem:[%s221_s3 + $0x38] sm:$0xff]  ;;  %v62_v3 = vld [vmem:[%s221_s3 + $0x30] sm:$0xff] }
   0x2   :  { %v21_v1 = vld [vmem:[%s218_s0] sm:$0xff]  ;;  %112 = vmatpush.msk.msra.mxu0 %vm31_vm0, %v22_v0  ;;  %80 = vmatpush.msra.mxu1 %v63_v2  ;;  %v61_v4 = vld [vmem:[%s221_s3 + $0x28] sm:$0xff]  ;;  %v59_v6 = vld [vmem:[%s221_s3 + $0x18] sm:$0xff] }
   0x3   :  { %113 = vmatmul.msk.f32.vlgmr.msra.gmra.mxu0 %vm27_vm1, %v21_v1  ;;  %v60_v5 = vld [vmem:[%s221_s3 + $0x20] sm:$0xff]  ;;  %v58_v7 = vld [vmem:[%s221_s3 + $0x10] sm:$0xff]  ;;  %v57_v8 = vld [vmem:[%s221_s3 + $0x8] sm:$0xff] }
   0x4   :  { %81 = vmatpush.msra.mxu1 %v62_v3  ;;  %v56_v9 = vld [vmem:[%s221_s3] sm:$0xff] }
   0x5   :  { %v118_v10 = vld [vmem:[%s220_s2] ss:$0 sm:$0xff] }
   0x6   :  { %82 = vmatpush.msra.mxu1 %v61_v4  ;;  %v119_v14 = vld [vmem:[%s222_s4] ss:$0 sm:$0xff] }
   0x8   :  { %83 = vmatpush.msra.mxu1 %v60_v5 }
   0xa   :  { %84 = vmatpush.msra.mxu1 %v59_v6 }
   0xc   :  { %85 = vmatpush.msra.mxu1 %v58_v7 }
   0xe   :  { %86 = vmatpush.msra.mxu1 %v57_v8 }
  0x10   :  { %87 = vmatpush.msra.mxu1 %v56_v9 }
  0x80   :  { %v52_v11 = vpop.f32.mrf.mxu0 }
  0x81   :  { %v53_v12 = vadd.f32 %v118_v10, %v52_v11 }
  0x83   :  { %v55_v13 = vmax.f32 %v53_v12, 0.0 }
  0x85   :  { %114 = vmatmul.msk.f32.vlgmr.msra.gmra.mxu1 %vm68_vm2, %v55_v13 }
 0x102   :  { %v89_v15 = vpop.f32.mrf.mxu1 }
 0x103   :  { %v90_v16 = vadd.f32 %v119_v14, %v89_v15 }
 0x105   :  { %93 = vst.msk [vmem:[#allocation2] sm:$0xff] %vm92_vm3, %v90_v16 }
 0x106   :  { %97 = vsyncadd [#allocation3], 112  ;;  %s100_s16 = sshll.u32 %s223_s5, 4  ;;  %s146_s17 = smov [#allocation2]   ;;  %s101_s16 = int_to_ptr.hbm [resolvable:$true] %s100_s16 }
 0x107   :  { %s98_s2 = sshll.u32 %s146_s17, 4  ;;  %s147_s18 = smov 16   ;;  %s99_s2 = int_to_ptr.vmem [resolvable:$true] %s98_s2 }
 0x108   :  { %s148_s19 = smov 1  }
 0x109   :  { %106 = dma.vmem_to_hbm [thread:$0]  %s99_s2, 16, %s101_s16, [#allocation3], %s147_s18, %s147_s18, %s148_s19  }
 0x10a   :  { %144 = dma.done.wait [#allocation3], 128  }
 0x10b   :  { %145 = vsyncadd [#allocation3], 4294967168 }
 0x10c   :  { %111 = vsyncpa [#allocation3], 1 }

</bundles_post_ra>
